<compile_context>
chip_gen: v6e
topology: v6e:2x2x1
jax: 0.10.0
libtpu: 0.0.40
codegen_flags: <defaults>
</compile_context>

<pallas_src>
import functools

import jax
import jax.numpy as jnp
from jax.experimental import pallas as pl
from jax.experimental.pallas import tpu as pltpu


# ----------------------------------------------------------------------------
# Kernel
# ----------------------------------------------------------------------------
def attention_gate_kernel(g_ref, x_ref, wg_ref, wx_ref, b_ref,
                          wpsi_ref, bpsi_ref, o_ref):
    # g_ref: (Cg, tp)   x_ref: (Cl, tp)        (compute dtype, e.g. f32/bf16)
    # wg_ref: (Cint, Cg) wx_ref: (Cint, Cl)    (compute dtype)
    # b_ref: (Cint, 1)  wpsi_ref: (Cint, 1)  bpsi_ref: (1, 1)   (f32)
    g1 = jnp.dot(wg_ref[...], g_ref[...], preferred_element_type=jnp.float32)
    x1 = jnp.dot(wx_ref[...], x_ref[...], preferred_element_type=jnp.float32)
    # relu(relu(z)) == relu(z): fold the torch module's double ReLU.
    s = jnp.maximum(g1 + x1 + b_ref[...], 0.0)                  # (Cint, tp) f32

    # psi projection has a single output channel: do it as a VPU multiply +
    # XLU sublane reduction instead of an N=1 MXU matmul.
    psi_logit = jnp.sum(s * wpsi_ref[...], axis=0, keepdims=True) + bpsi_ref[...]
    psi = jax.nn.sigmoid(psi_logit)                             # (1, tp) f32

    # Gate x in f32 (keeps the elementwise tail precise on all generations).
    out = x_ref[...].astype(jnp.float32) * psi                  # (Cl, tp)
    o_ref[...] = out.astype(o_ref.dtype)


# ----------------------------------------------------------------------------
# Wrapper
# ----------------------------------------------------------------------------
def _pick_pixel_tile(hw, cg, cl, cint, in_itemsize, out_itemsize,
                     tile_budget_bytes=16 << 20, max_tp=8192):
    """Largest multiple-of-128 pixel tile whose buffered VMEM footprint fits."""
    per_pixel = (2 * (cg + cl) * in_itemsize        # double-buffered g, x
                 + 2 * cl * out_itemsize            # double-buffered out
                 + 3 * cint * 4)                    # f32 temporaries g1/x1/s
    tp = tile_budget_bytes // max(per_pixel, 1)
    hw_pad128 = pl.cdiv(hw, 128) * 128
    tp = min(int(tp), max_tp, hw_pad128)
    tp = max(128, (tp // 128) * 128)
    return tp


def attention_gate_pallas(g_nchw, x_nchw, params, *,
                          compute_dtype=jnp.float32,
                          pixel_tile=None,
                          vmem_limit_bytes=None):
    """g_nchw: (N, Cg, H, W), x_nchw: (N, Cl, H, W). Returns (N, Cl, H, W)."""
    N, Cg, H, W = g_nchw.shape
    N2, Cl, H2, W2 = x_nchw.shape
    assert (N, H, W) == (N2, H2, W2)
    Cint = params["wg"].shape[0]
    HW = H * W
    out_dtype = x_nchw.dtype

    in_itemsize = jnp.dtype(compute_dtype).itemsize
    out_itemsize = jnp.dtype(out_dtype).itemsize

    # NCHW -> (N, C, H*W): a contiguous reshape, no HBM transpose pass.
    g3 = g_nchw.reshape(N, Cg, HW).astype(compute_dtype)
    x3 = x_nchw.reshape(N, Cl, HW).astype(compute_dtype)

    tp = pixel_tile or _pick_pixel_tile(HW, Cg, Cl, Cint, in_itemsize, out_itemsize)
    n_tiles = pl.cdiv(HW, tp)
    HW_pad = n_tiles * tp
    if HW_pad != HW:  # masked tail via zero-padding; padded pixels are sliced off
        pad = HW_pad - HW
        g3 = jnp.pad(g3, ((0, 0), (0, 0), (0, pad)))
        x3 = jnp.pad(x3, ((0, 0), (0, 0), (0, pad)))

    # Fold the two BN-folded biases into one; psi params stay f32.
    wg = params["wg"].astype(compute_dtype)                     # (Cint, Cg)
    wx = params["wx"].astype(compute_dtype)                     # (Cint, Cl)
    b = (params["bg"] + params["bx"]).reshape(Cint, 1).astype(jnp.float32)
    wpsi = params["wpsi"].reshape(Cint, 1).astype(jnp.float32)
    bpsi = params["bpsi"].reshape(1, 1).astype(jnp.float32)

    grid = (N, n_tiles)

    if vmem_limit_bytes is None:
        tile_bytes = 2 * tp * ((Cg + Cl) * in_itemsize + Cl * out_itemsize)
        inter_bytes = 4 * Cint * tp * 4
        w_bytes = Cint * (Cg + Cl) * in_itemsize + (2 * Cint + 2) * 4
        need = tile_bytes + inter_bytes + w_bytes + (4 << 20)
        # >= 32 MiB (safe raise over v5e/v6e scoped defaults), <= 48 MiB
        # (leaves headroom on v7x's 64 MiB physical VMEM).
        vmem_limit_bytes = int(min(max(need, 32 << 20), 48 << 20))

    def _data_spec(c):
        return pl.BlockSpec((None, c, tp), lambda n, p: (n, 0, p))

    def _const_spec(shape, single_buffer):
        if single_buffer:
            # Grid-invariant operand: one buffer is enough, save VMEM.
            return pl.BlockSpec(shape, lambda n, p: (0, 0),
                                pipeline_mode=pl.Buffered(1))
        return pl.BlockSpec(shape, lambda n, p: (0, 0))

    def _run(single_buffer_weights):
        in_specs = [
            _data_spec(Cg),                                    # g
            _data_spec(Cl),                                    # x
            _const_spec((Cint, Cg), single_buffer_weights),    # wg
            _const_spec((Cint, Cl), single_buffer_weights),    # wx
            _const_spec((Cint, 1), single_buffer_weights),     # b (= bg + bx)
            _const_spec((Cint, 1), single_buffer_weights),     # wpsi
            _const_spec((1, 1), single_buffer_weights),        # bpsi
        ]
        out_specs = pl.BlockSpec((None, Cl, tp), lambda n, p: (n, 0, p))
        return pl.pallas_call(
            attention_gate_kernel,
            out_shape=jax.ShapeDtypeStruct((N, Cl, HW_pad), out_dtype),
            grid_spec=pltpu.PrefetchScalarGridSpec(
                num_scalar_prefetch=0,
                grid=grid,
                in_specs=in_specs,
                out_specs=out_specs),
            compiler_params=pltpu.CompilerParams(
                dimension_semantics=("parallel", "parallel"),
                vmem_limit_bytes=vmem_limit_bytes),
        )(g3, x3, wg, wx, b, wpsi, bpsi)

    try:
        out3 = _run(single_buffer_weights=True)
    except Exception:
        # Fallback for JAX versions without BlockSpec(pipeline_mode=Buffered(1));
        # identical semantics, weights merely double-buffered (they are small).
        out3 = _run(single_buffer_weights=False)

    if HW_pad != HW:
        out3 = out3[:, :, :HW]
    return out3.reshape(N, Cl, H, W)


# ----------------------------------------------------------------------------
# Params (synthetic Conv1x1 + eval-mode BatchNorm, folded) and JAX reference
# ----------------------------------------------------------------------------
def make_params(key, in_channels_g, in_channels_l, inter_channels,
                eps=1e-5, dtype=jnp.float32):
    """Deterministic synthetic weights; BN (eval-mode) folded into the convs.

    Weights are stored channels-first: wg (Cint, Cg), wx (Cint, Cl) so that the
    1x1 conv is out = W @ X with pixels on the last axis.
    """
    ks = jax.random.split(key, 10)

    def conv1x1(k, cin, cout):
        w = 0.1 * jax.random.normal(k, (cout, cin), dtype)   # torch layout (out, in)
        b = 0.05 * jnp.arange(cout, dtype=dtype)
        return w, b

    def bn_params(kg, kb, c):
        gamma = 1.0 + 0.1 * jax.random.normal(kg, (c,), dtype)
        beta = 0.1 * jax.random.normal(kb, (c,), dtype)
        return gamma, beta, jnp.zeros((c,), dtype), jnp.ones((c,), dtype)

    def fold(w, b, gamma, beta, mean, var):
        scale = gamma / jnp.sqrt(var + eps)                  # (cout,)
        w_eff = w * scale[:, None]                           # (cout, cin)
        b_eff = scale * (b - mean) + beta
        return w_eff, b_eff

    wg_raw, bg_raw = conv1x1(ks[0], in_channels_g, inter_channels)
    wx_raw, bx_raw = conv1x1(ks[1], in_channels_l, inter_channels)
    wpsi_raw, bpsi_raw = conv1x1(ks[2], inter_channels, 1)

    gg, bgm, mg, vg = bn_params(ks[3], ks[4], inter_channels)
    gx, bxm, mx, vx = bn_params(ks[5], ks[6], inter_channels)

    wg, bg = fold(wg_raw, bg_raw, gg, bgm, mg, vg)
    wx, bx = fold(wx_raw, bx_raw, gx, bxm, mx, vx)

    return {"wg": wg, "bg": bg, "wx": wx, "bx": bx,
            "wpsi": wpsi_raw.reshape(inter_channels),
            "bpsi": bpsi_raw.reshape(1)}


def attention_gate_ref(g_nchw, x_nchw, params):
    """Pure-JAX reference (channels-first) for sanity checking."""
    N, Cg, H, W = g_nchw.shape
    _, Cl, _, _ = x_nchw.shape
    g = g_nchw.reshape(N, Cg, H * W).astype(jnp.float32)
    x = x_nchw.reshape(N, Cl, H * W).astype(jnp.float32)
    g1 = jnp.einsum("oc,ncp->nop", params["wg"], g) + params["bg"][None, :, None]
    x1 = jnp.einsum("oc,ncp->nop", params["wx"], x) + params["bx"][None, :, None]
    s = jnp.maximum(g1 + x1, 0.0)
    logit = jnp.einsum("c,ncp->np", params["wpsi"], s) + params["bpsi"]
    psi = jax.nn.sigmoid(logit)[:, None, :]
    out = x * psi
    return out.reshape(N, Cl, H, W).astype(x_nchw.dtype)


# ----------------------------------------------------------------------------
# Self-test
# ----------------------------------------------------------------------------
if __name__ == "__main__":
    key = jax.random.PRNGKey(0)
    kp, kg, kx, kg2, kx2 = jax.random.split(key, 5)

    N, Cg, Cl, Cint, Hs, Ws = 2, 4, 4, 8, 16, 16
    params = make_params(kp, Cg, Cl, Cint)
    g = jax.random.normal(kg, (N, Cg, Hs, Ws), jnp.float32)
    x = jax.random.normal(kx, (N, Cl, Hs, Ws), jnp.float32)
    ref = attention_gate_ref(g, x, params)

    # f32 path (tight tolerance)
    out = jax.block_until_ready(attention_gate_pallas(g, x, params))
    assert out.shape == (N, Cl, Hs, Ws)
    assert jnp.allclose(out, ref, atol=1e-5, rtol=1e-5), "f32 mismatch vs reference"

    # bf16 I/O path (halves dominant HBM read traffic; f32 accumulation + tail)
    out_bf16 = jax.block_until_ready(
        attention_gate_pallas(g, x, params, compute_dtype=jnp.bfloat16))
    assert jnp.allclose(out_bf16, ref, atol=5e-2, rtol=5e-2), "bf16 mismatch vs reference"

    # Ragged pixel count (H*W not a multiple of 128) exercises the padded tail.
    g_odd = jax.random.normal(kg2, (1, Cg, 10, 10), jnp.float32)
    x_odd = jax.random.normal(kx2, (1, Cl, 10, 10), jnp.float32)
    out_odd = jax.block_until_ready(attention_gate_pallas(g_odd, x_odd, params))
    ref_odd = attention_gate_ref(g_odd, x_odd, params)
    assert jnp.allclose(out_odd, ref_odd, atol=1e-5, rtol=1e-5), "ragged mismatch"

    print("KERNEL_OK")
</pallas_src>

<mosaic_0001>
module attributes {stable_mosaic.version = 11 : i64} {
  func.func @attention_gate_kernel(%arg0: i32, %arg1: i32, %arg2: memref<1x4x256xf32, #tpu.memory_space<vmem>>, %arg3: memref<1x4x256xf32, #tpu.memory_space<vmem>>, %arg4: memref<8x4xf32, #tpu.memory_space<vmem>>, %arg5: memref<8x4xf32, #tpu.memory_space<vmem>>, %arg6: memref<8x1xf32, #tpu.memory_space<vmem>>, %arg7: memref<8x1xf32, #tpu.memory_space<vmem>>, %arg8: memref<1x1xf32, #tpu.memory_space<vmem>>, %arg9: memref<1x4x256xf32, #tpu.memory_space<vmem>>) attributes {dimension_semantics = [#tpu.dimension_semantics<parallel>, #tpu.dimension_semantics<parallel>], iteration_bounds = array<i64: 2, 1>, scalar_prefetch = 0 : i64, scratch_operands = 0 : i64, tpu.core_type = #tpu.core_type<tc>, window_params = [{transform_indices = @transform_0, window_bounds = array<i64: 1, 4, 256>}, {transform_indices = @transform_1, window_bounds = array<i64: 1, 4, 256>}, {pipeline_mode = #tpu.pipeline_mode<synchronous>, transform_indices = @transform_2, window_bounds = array<i64: 8, 4>}, {pipeline_mode = #tpu.pipeline_mode<synchronous>, transform_indices = @transform_3, window_bounds = array<i64: 8, 4>}, {pipeline_mode = #tpu.pipeline_mode<synchronous>, transform_indices = @transform_4, window_bounds = array<i64: 8, 1>}, {pipeline_mode = #tpu.pipeline_mode<synchronous>, transform_indices = @transform_5, window_bounds = array<i64: 8, 1>}, {pipeline_mode = #tpu.pipeline_mode<synchronous>, transform_indices = @transform_6, window_bounds = array<i64: 1, 1>}, {transform_indices = @transform_7, window_bounds = array<i64: 1, 4, 256>}]} {
    %c0 = arith.constant 0 : index
    %c0_0 = arith.constant 0 : index
    %0 = vector.load %arg4[%c0, %c0_0] : memref<8x4xf32, #tpu.memory_space<vmem>>, vector<8x4xf32>
    %c0_1 = arith.constant 0 : index
    %c0_2 = arith.constant 0 : index
    %c0_3 = arith.constant 0 : index
    %1 = vector.load %arg2[%c0_1, %c0_2, %c0_3] : memref<1x4x256xf32, #tpu.memory_space<vmem>>, vector<1x4x256xf32>
    %2 = vector.shape_cast %1 : vector<1x4x256xf32> to vector<4x256xf32>
    %cst = arith.constant dense<0.000000e+00> : vector<8x256xf32>
    %3 = tpu.matmul %0, %2, %cst {dimension_numbers = #tpu.dot_dimension_numbers<[1], [0], [0], [1], [0, 0, 1, 1], [], []>} : vector<8x4xf32>, vector<4x256xf32>, vector<8x256xf32> -> vector<8x256xf32>
    %c0_4 = arith.constant 0 : index
    %c0_5 = arith.constant 0 : index
    %4 = vector.load %arg5[%c0_4, %c0_5] : memref<8x4xf32, #tpu.memory_space<vmem>>, vector<8x4xf32>
    %c0_6 = arith.constant 0 : index
    %c0_7 = arith.constant 0 : index
    %c0_8 = arith.constant 0 : index
    %5 = vector.load %arg3[%c0_6, %c0_7, %c0_8] : memref<1x4x256xf32, #tpu.memory_space<vmem>>, vector<1x4x256xf32>
    %6 = vector.shape_cast %5 : vector<1x4x256xf32> to vector<4x256xf32>
    %cst_9 = arith.constant dense<0.000000e+00> : vector<8x256xf32>
    %7 = tpu.matmul %4, %6, %cst_9 {dimension_numbers = #tpu.dot_dimension_numbers<[1], [0], [0], [1], [0, 0, 1, 1], [], []>} : vector<8x4xf32>, vector<4x256xf32>, vector<8x256xf32> -> vector<8x256xf32>
    %8 = arith.addf %3, %7 : vector<8x256xf32>
    %c0_10 = arith.constant 0 : index
    %c0_11 = arith.constant 0 : index
    %9 = vector.load %arg6[%c0_10, %c0_11] : memref<8x1xf32, #tpu.memory_space<vmem>>, vector<8x1xf32>
    %10 = vector.broadcast %9 : vector<8x1xf32> to vector<8x256xf32>
    %11 = arith.addf %8, %10 : vector<8x256xf32>
    %cst_12 = arith.constant 0.000000e+00 : f32
    %12 = vector.broadcast %cst_12 : f32 to vector<8x256xf32>
    %13 = arith.maximumf %11, %12 : vector<8x256xf32>
    %c0_13 = arith.constant 0 : index
    %c0_14 = arith.constant 0 : index
    %14 = vector.load %arg7[%c0_13, %c0_14] : memref<8x1xf32, #tpu.memory_space<vmem>>, vector<8x1xf32>
    %15 = vector.broadcast %14 : vector<8x1xf32> to vector<8x256xf32>
    %16 = arith.mulf %13, %15 : vector<8x256xf32>
    %cst_15 = arith.constant dense<0.000000e+00> : vector<256xf32>
    %17 = vector.multi_reduction <add>, %16, %cst_15 [0] : vector<8x256xf32> to vector<256xf32>
    %18 = vector.shape_cast %17 : vector<256xf32> to vector<1x256xf32>
    %c0_16 = arith.constant 0 : index
    %c0_17 = arith.constant 0 : index
    %19 = vector.load %arg8[%c0_16, %c0_17] : memref<1x1xf32, #tpu.memory_space<vmem>>, vector<1x1xf32>
    %20 = vector.broadcast %19 : vector<1x1xf32> to vector<1x256xf32>
    %21 = arith.addf %18, %20 : vector<1x256xf32>
    %22 = arith.negf %21 : vector<1x256xf32>
    %23 = math.exp %22 : vector<1x256xf32>
    %cst_18 = arith.constant 1.000000e+00 : f32
    %24 = vector.broadcast %cst_18 : f32 to vector<1x256xf32>
    %25 = arith.addf %24, %23 : vector<1x256xf32>
    %26 = arith.divf %24, %25 : vector<1x256xf32>
    %c0_19 = arith.constant 0 : index
    %c0_20 = arith.constant 0 : index
    %c0_21 = arith.constant 0 : index
    %27 = vector.load %arg3[%c0_19, %c0_20, %c0_21] : memref<1x4x256xf32, #tpu.memory_space<vmem>>, vector<1x4x256xf32>
    %28 = vector.shape_cast %27 : vector<1x4x256xf32> to vector<4x256xf32>
    %29 = vector.broadcast %26 : vector<1x256xf32> to vector<4x256xf32>
    %30 = arith.mulf %28, %29 : vector<4x256xf32>
    %c0_22 = arith.constant 0 : index
    %c0_23 = arith.constant 0 : index
    %c0_24 = arith.constant 0 : index
    %31 = vector.load %arg9[%c0_22, %c0_23, %c0_24] : memref<1x4x256xf32, #tpu.memory_space<vmem>>, vector<1x4x256xf32>
    %32 = vector.shape_cast %31 : vector<1x4x256xf32> to vector<4x256xf32>
    %33 = vector.shape_cast %30 : vector<4x256xf32> to vector<1x4x256xf32>
    tpu.vector_store %arg9[%c0_22, %c0_23, %c0_24], %33 {strides = array<i32>} : memref<1x4x256xf32, #tpu.memory_space<vmem>>, vector<1x4x256xf32>,
    return
  }
  func.func @transform_0(%arg0: i32, %arg1: i32) -> (i32, i32, i32) {
    %c0_i32 = arith.constant 0 : i32
    %c0_i32_0 = arith.constant 0 : i32
    return %arg0, %c0_i32, %arg1 : i32, i32, i32
  }
  func.func @transform_1(%arg0: i32, %arg1: i32) -> (i32, i32, i32) {
    %c0_i32 = arith.constant 0 : i32
    %c0_i32_0 = arith.constant 0 : i32
    return %arg0, %c0_i32, %arg1 : i32, i32, i32
  }
  func.func @transform_2(%arg0: i32, %arg1: i32) -> (i32, i32) {
    %c0_i32 = arith.constant 0 : i32
    %c0_i32_0 = arith.constant 0 : i32
    %c0_i32_1 = arith.constant 0 : i32
    return %c0_i32, %c0_i32_0 : i32, i32
  }
  func.func @transform_3(%arg0: i32, %arg1: i32) -> (i32, i32) {
    %c0_i32 = arith.constant 0 : i32
    %c0_i32_0 = arith.constant 0 : i32
    %c0_i32_1 = arith.constant 0 : i32
    return %c0_i32, %c0_i32_0 : i32, i32
  }
  func.func @transform_4(%arg0: i32, %arg1: i32) -> (i32, i32) {
    %c0_i32 = arith.constant 0 : i32
    %c0_i32_0 = arith.constant 0 : i32
    %c0_i32_1 = arith.constant 0 : i32
    return %c0_i32, %c0_i32_0 : i32, i32
  }
  func.func @transform_5(%arg0: i32, %arg1: i32) -> (i32, i32) {
    %c0_i32 = arith.constant 0 : i32
    %c0_i32_0 = arith.constant 0 : i32
    %c0_i32_1 = arith.constant 0 : i32
    return %c0_i32, %c0_i32_0 : i32, i32
  }
  func.func @transform_6(%arg0: i32, %arg1: i32) -> (i32, i32) {
    %c0_i32 = arith.constant 0 : i32
    %c0_i32_0 = arith.constant 0 : i32
    %c0_i32_1 = arith.constant 0 : i32
    return %c0_i32, %c0_i32_0 : i32, i32
  }
  func.func @transform_7(%arg0: i32, %arg1: i32) -> (i32, i32, i32) {
    %c0_i32 = arith.constant 0 : i32
    %c0_i32_0 = arith.constant 0 : i32
    return %arg0, %c0_i32, %arg1 : i32, i32, i32
  }
}

module attributes {stable_mosaic.version = 11 : i64} {
  func.func @attention_gate_kernel(%arg0: i32, %arg1: i32, %arg2: memref<1x4x256xf32, #tpu.memory_space<vmem>>, %arg3: memref<1x4x256xf32, #tpu.memory_space<vmem>>, %arg4: memref<8x4xf32, #tpu.memory_space<vmem>>, %arg5: memref<8x4xf32, #tpu.memory_space<vmem>>, %arg6: memref<8x1xf32, #tpu.memory_space<vmem>>, %arg7: memref<8x1xf32, #tpu.memory_space<vmem>>, %arg8: memref<1x1xf32, #tpu.memory_space<vmem>>, %arg9: memref<1x4x256xf32, #tpu.memory_space<vmem>>) attributes {dimension_semantics = [#tpu.dimension_semantics<parallel>, #tpu.dimension_semantics<parallel>], iteration_bounds = array<i64: 2, 1>, scalar_prefetch = 0 : i64, scratch_operands = 0 : i64, tpu.core_type = #tpu.core_type<tc>, window_params = [{transform_indices = @transform_0, window_bounds = array<i64: 1, 4, 256>}, {transform_indices = @transform_1, window_bounds = array<i64: 1, 4, 256>}, {pipeline_mode = #tpu.pipeline_mode<synchronous>, transform_indices = @transform_2, window_bounds = array<i64: 8, 4>}, {pipeline_mode = #tpu.pipeline_mode<synchronous>, transform_indices = @transform_3, window_bounds = array<i64: 8, 4>}, {pipeline_mode = #tpu.pipeline_mode<synchronous>, transform_indices = @transform_4, window_bounds = array<i64: 8, 1>}, {pipeline_mode = #tpu.pipeline_mode<synchronous>, transform_indices = @transform_5, window_bounds = array<i64: 8, 1>}, {pipeline_mode = #tpu.pipeline_mode<synchronous>, transform_indices = @transform_6, window_bounds = array<i64: 1, 1>}, {transform_indices = @transform_7, window_bounds = array<i64: 1, 4, 256>}]} {
    %c0 = arith.constant 0 : index
    %c0_0 = arith.constant 0 : index
    %0 = vector.load %arg4[%c0, %c0_0] : memref<8x4xf32, #tpu.memory_space<vmem>>, vector<8x4xf32>
    %c0_1 = arith.constant 0 : index
    %c0_2 = arith.constant 0 : index
    %c0_3 = arith.constant 0 : index
    %1 = vector.load %arg2[%c0_1, %c0_2, %c0_3] : memref<1x4x256xf32, #tpu.memory_space<vmem>>, vector<1x4x256xf32>
    %2 = vector.shape_cast %1 : vector<1x4x256xf32> to vector<4x256xf32>
    %cst = arith.constant dense<0.000000e+00> : vector<8x256xf32>
    %3 = tpu.matmul %0, %2, %cst {dimension_numbers = #tpu.dot_dimension_numbers<[1], [0], [0], [1], [0, 0, 1, 1], [], []>} : vector<8x4xf32>, vector<4x256xf32>, vector<8x256xf32> -> vector<8x256xf32>
    %c0_4 = arith.constant 0 : index
    %c0_5 = arith.constant 0 : index
    %4 = vector.load %arg5[%c0_4, %c0_5] : memref<8x4xf32, #tpu.memory_space<vmem>>, vector<8x4xf32>
    %c0_6 = arith.constant 0 : index
    %c0_7 = arith.constant 0 : index
    %c0_8 = arith.constant 0 : index
    %5 = vector.load %arg3[%c0_6, %c0_7, %c0_8] : memref<1x4x256xf32, #tpu.memory_space<vmem>>, vector<1x4x256xf32>
    %6 = vector.shape_cast %5 : vector<1x4x256xf32> to vector<4x256xf32>
    %cst_9 = arith.constant dense<0.000000e+00> : vector<8x256xf32>
    %7 = tpu.matmul %4, %6, %cst_9 {dimension_numbers = #tpu.dot_dimension_numbers<[1], [0], [0], [1], [0, 0, 1, 1], [], []>} : vector<8x4xf32>, vector<4x256xf32>, vector<8x256xf32> -> vector<8x256xf32>
    %8 = arith.addf %3, %7 : vector<8x256xf32>
    %c0_10 = arith.constant 0 : index
    %c0_11 = arith.constant 0 : index
    %9 = vector.load %arg6[%c0_10, %c0_11] : memref<8x1xf32, #tpu.memory_space<vmem>>, vector<8x1xf32>
    %10 = vector.broadcast %9 : vector<8x1xf32> to vector<8x256xf32>
    %11 = arith.addf %8, %10 : vector<8x256xf32>
    %cst_12 = arith.constant 0.000000e+00 : f32
    %12 = vector.broadcast %cst_12 : f32 to vector<8x256xf32>
    %13 = arith.maximumf %11, %12 : vector<8x256xf32>
    %c0_13 = arith.constant 0 : index
    %c0_14 = arith.constant 0 : index
    %14 = vector.load %arg7[%c0_13, %c0_14] : memref<8x1xf32, #tpu.memory_space<vmem>>, vector<8x1xf32>
    %15 = vector.broadcast %14 : vector<8x1xf32> to vector<8x256xf32>
    %16 = arith.mulf %13, %15 : vector<8x256xf32>
    %cst_15 = arith.constant dense<0.000000e+00> : vector<256xf32>
    %17 = vector.multi_reduction <add>, %16, %cst_15 [0] : vector<8x256xf32> to vector<256xf32>
    %18 = vector.shape_cast %17 : vector<256xf32> to vector<1x256xf32>
    %c0_16 = arith.constant 0 : index
    %c0_17 = arith.constant 0 : index
    %19 = vector.load %arg8[%c0_16, %c0_17] : memref<1x1xf32, #tpu.memory_space<vmem>>, vector<1x1xf32>
    %20 = vector.broadcast %19 : vector<1x1xf32> to vector<1x256xf32>
    %21 = arith.addf %18, %20 : vector<1x256xf32>
    %22 = arith.negf %21 : vector<1x256xf32>
    %23 = math.exp %22 : vector<1x256xf32>
    %cst_18 = arith.constant 1.000000e+00 : f32
    %24 = vector.broadcast %cst_18 : f32 to vector<1x256xf32>
    %25 = arith.addf %24, %23 : vector<1x256xf32>
    %26 = arith.divf %24, %25 : vector<1x256xf32>
    %c0_19 = arith.constant 0 : index
    %c0_20 = arith.constant 0 : index
    %c0_21 = arith.constant 0 : index
    %27 = vector.load %arg3[%c0_19, %c0_20, %c0_21] : memref<1x4x256xf32, #tpu.memory_space<vmem>>, vector<1x4x256xf32>
    %28 = vector.shape_cast %27 : vector<1x4x256xf32> to vector<4x256xf32>
    %29 = vector.broadcast %26 : vector<1x256xf32> to vector<4x256xf32>
    %30 = arith.mulf %28, %29 : vector<4x256xf32>
    %c0_22 = arith.constant 0 : index
    %c0_23 = arith.constant 0 : index
    %c0_24 = arith.constant 0 : index
    %31 = vector.load %arg9[%c0_22, %c0_23, %c0_24] : memref<1x4x256xf32, #tpu.memory_space<vmem>>, vector<1x4x256xf32>
    %32 = vector.shape_cast %31 : vector<1x4x256xf32> to vector<4x256xf32>
    %33 = vector.shape_cast %30 : vector<4x256xf32> to vector<1x4x256xf32>
    tpu.vector_store %arg9[%c0_22, %c0_23, %c0_24], %33 {strides = array<i32>} : memref<1x4x256xf32, #tpu.memory_space<vmem>>, vector<1x4x256xf32>,
    return
  }
  func.func @transform_0(%arg0: i32, %arg1: i32) -> (i32, i32, i32) {
    %c0_i32 = arith.constant 0 : i32
    %c0_i32_0 = arith.constant 0 : i32
    return %arg0, %c0_i32, %arg1 : i32, i32, i32
  }
  func.func @transform_1(%arg0: i32, %arg1: i32) -> (i32, i32, i32) {
    %c0_i32 = arith.constant 0 : i32
    %c0_i32_0 = arith.constant 0 : i32
    return %arg0, %c0_i32, %arg1 : i32, i32, i32
  }
  func.func @transform_2(%arg0: i32, %arg1: i32) -> (i32, i32) {
    %c0_i32 = arith.constant 0 : i32
    %c0_i32_0 = arith.constant 0 : i32
    %c0_i32_1 = arith.constant 0 : i32
    return %c0_i32, %c0_i32_0 : i32, i32
  }
  func.func @transform_3(%arg0: i32, %arg1: i32) -> (i32, i32) {
    %c0_i32 = arith.constant 0 : i32
    %c0_i32_0 = arith.constant 0 : i32
    %c0_i32_1 = arith.constant 0 : i32
    return %c0_i32, %c0_i32_0 : i32, i32
  }
  func.func @transform_4(%arg0: i32, %arg1: i32) -> (i32, i32) {
    %c0_i32 = arith.constant 0 : i32
    %c0_i32_0 = arith.constant 0 : i32
    %c0_i32_1 = arith.constant 0 : i32
    return %c0_i32, %c0_i32_0 : i32, i32
  }
  func.func @transform_5(%arg0: i32, %arg1: i32) -> (i32, i32) {
    %c0_i32 = arith.constant 0 : i32
    %c0_i32_0 = arith.constant 0 : i32
    %c0_i32_1 = arith.constant 0 : i32
    return %c0_i32, %c0_i32_0 : i32, i32
  }
  func.func @transform_6(%arg0: i32, %arg1: i32) -> (i32, i32) {
    %c0_i32 = arith.constant 0 : i32
    %c0_i32_0 = arith.constant 0 : i32
    %c0_i32_1 = arith.constant 0 : i32
    return %c0_i32, %c0_i32_0 : i32, i32
  }
  func.func @transform_7(%arg0: i32, %arg1: i32) -> (i32, i32, i32) {
    %c0_i32 = arith.constant 0 : i32
    %c0_i32_0 = arith.constant 0 : i32
    return %arg0, %c0_i32, %arg1 : i32, i32, i32
  }
}

</mosaic_0001>

<bundles_post_ra>
// kernel: tpu_custom_call.1
= control target key start
LH: loop header
LB: loop body
LE: loop exit
PB: predicated region body
PF: predicated region fallthrough
CT: control target
= control target key end

     0   :  { %s1022_s0 = inlined_call_operand.vmem [shape: f32[2,4,256], index: 0, kind: input, shape index: {}]   ;;  %s1023_s1 = inlined_call_operand.vmem [shape: f32[2,4,256], index: 1, kind: input, shape index: {}]   ;;  %s1024_s2 = inlined_call_operand.vmem [shape: f32[8,4], index: 2, kind: input, shape index: {}]   ;;  %s1025_s3 = inlined_call_operand.vmem [shape: f32[8,4], index: 3, kind: input, shape index: {}]   ;;  %s1026_s4 = inlined_call_operand.vmem [shape: f32[8,1], index: 4, kind: input, shape index: {}]   ;;  %s1027_s5 = inlined_call_operand.vmem [shape: f32[8,1], index: 5, kind: input, shape index: {}]   ;;  %s1028_s6 = inlined_call_operand.<no memory space> [shape: f32[1,1], index: 6, kind: input, shape index: {}]   ;;  %s1029_s7 = inlined_call_operand.hbm [shape: f32[2,4,256], index: 7, kind: output, shape index: {}]  }
   0x1   :  { %v12_v0 = vstv %s1028_s6 }
   0x2   :  { %13 = vst [vmem:[#allocation2] sm:$0x1] %v12_v0 }
   0x3   :  { %14 = vsyncpa [#allocation4], 0 }
   0x4   :  { %16 = vsyncpa [#allocation4 + $0x1], 0  ;;  %s902_s26 = smov 0   ;;  %s904_s27 = smov 0  }
   0x5   :  { %s906_s28 = smov 0   ;;  %s908_s29 = smov 0  }
   0x6   :  { %s910_s30 = smov 0   ;;  %s912_s8 = smov 0  }
   0x7 LB: > { %s683_s6 = sadd.s32 4294967295, %s854_s8   ;;  %s684_s9 = sadd.s32 4294967294, %s854_s8   ;;  %s854_s8 = sphi %s912_s8, %s22_s8   ;;  %s850_s30 = sphi %s910_s30, %s1036_s30   ;;  %s846_s29 = sphi %s908_s29, %s1035_s29   ;;  %s842_s28 = sphi %s906_s28, %s1034_s28   ;;  %s838_s27 = sphi %s904_s27, %s1033_s27   ;;  %s834_s26 = sphi %s902_s26, %s1032_s26  }
   0x8   : > { %s34_s10 = sadd.s32 1, %s850_s30  ;;  %s204_s11 = sadd.s32 1, %s842_s28 }
   0x9   : > { %p36_p0 = scmp.ge.s32.totalorder %s34_s10, 2  ;;  %p214_p1 = scmp.ne.s32.totalorder %s842_s28, %s838_s27 }
   0xa   : > { %p215_p2 = scmp.eq.s32.totalorder %s683_s6, 1  ;;  %p220_p3 = scmp.ne.s32.totalorder %s838_s27, %s834_s26 }
   0xb   : > { %s1038_s10 = smov (%p36_p0, %s34_s10), 0  ;;  %p221_p5 = scmp.eq.s32.totalorder %s684_s9, 1 }
   0xc   : > { %p942_p4 = por %p215_p2, %p214_p1  ;;  %s199_s13 = ssub.s32 %s850_s30, %s1038_s10 }
   0xd   : > { %p687_p6 = scmp.ge.s32.totalorder %s854_s8, 1  ;;  %p202_p7 = scmp.eq.s32.totalorder %s199_s13, 0 }
   0xe   : > { %p949_p8 = por %p221_p5, %p220_p3  ;;  %p280_p9 = scmp.lt.s32.totalorder %s854_s8, 3 }
   0xf   : > { %s955_s15 = scalar_select %p202_p7, %s842_s28, %s204_s11  }
  0x10   : > { %p281_p10 = pnand %p687_p6, %p280_p9 }
  0x11   : > { %p326_p11 = scmp.lt.s32.totalorder (!%p281_p10), %s846_s29, 1  ;;  %s708_s20 = sshll.u32 (!%p281_p10), %s846_s29, 7 }
  0x12   : > { %284 = sbr.rel (%p281_p10) target bundleno = 299 (0x12b), region = 48  ;;  %s587_s25 = scalar_lea.hbm (!%p281_p10), %s1029_s7, %s708_s20 }
  0x13   : > { %s858_s11 = smov (!%p281_p10), [#allocation3]  }
  0x14   : > { %s782_s13 = sshll.u32 (!%p281_p10), %s858_s11, 4  ;;  %s783_s13 = int_to_ptr.vmem [resolvable:$false] %s782_s13 }
  0x17   : > { %v856_v1 = vmov 0.0   ;;  %v512_v2 = vld [vmem:[%s1026_s4] sm:$0xff]  ;;  %s327_s18 = scalar_select %p326_p11, %s846_s29, 1  ;;  %v857_v4 = vmov 0   ;;  %vm356_vm0 = vcmask 1043456   ;;  %vm352_vm1 = vcmask 31744  }
  0x18   : > { %425 = vmatprep.mubr.f32.mxu0 %v856_v1  ;;  %505 = vmatprep.mubr.f32.mxu1 %v856_v1  ;;  %v542_v3 = vld [vmem:[#allocation2] sm:$0x1]  ;;  %v548_v22 = vlaneseq  ;;  %s784_s29 = scalar_lea.vmem %s783_s13, 256 }
  0x19   : > { %766 = vset.pattern.permute.xlu0 %v857_v4  ;;  %767 = vset.pattern.permute.xlu1 %v857_v4  ;;  %s706_s19 = sshll.u32 %s327_s18, 3  ;;  %v522_v5 = vld [vmem:[%s1027_s5] sm:$0xff]  ;;  %s322_s18 = sand.u32 1, %s838_s27  }
  0x1a   : > { %515 = vperm.xlu0 %766, %v512_v2   ;;  %545 = vperm.xlu1 %767, %v542_v3   ;;  %s343_s24 = scalar_lea.vmem %s1023_s1, %s706_s19  ;;  %s333_s9 = scalar_lea.vmem %s1022_s0, %s706_s19  ;;  %v348_v10 = vld [vmem:[%s1025_s3] sm:$0xff]  ;;  %v549_v28 = vshrl.u32 %v548_v22, 7 }
  0x1b   : > { %v971_v6 = vld [vmem:[%s343_s24] sm:$0xff]  ;;  %s688_s19 = sshll.u32 %s322_s18, 3  ;;  %s573_s6 = scalar_lea.sflag [#allocation4], %s322_s18 }
  0x1c   : > { %v347_v7 = vld [vmem:[%s333_s9] sm:$0xff]  ;;  %v351_v8 = vcombine.high %v971_v6, %v971_v6  ;;  %v550_v33 = vsub.s32 0, %v549_v28  ;;  %s324_s21 = scalar_lea.vmem [#allocation3], %s688_s19 }
  0x1d   : > { %v433_v9 = vcombine.high %v347_v7, %v347_v7  ;;  %v346_v11 = vld [vmem:[%s1024_s2] sm:$0xff]  ;;  %s589_s22 = sshll.u32 %s324_s21, 4  ;;  %s590_s22 = int_to_ptr.vmem [resolvable:$true] %s589_s22 }
  0x1e   : > { %525 = vperm.xlu0 %766, %v522_v5   ;;  %693 = vmatprep.subr.msk.mxu0 %vm356_vm0, %v351_v8  ;;  %s778_s9 = scalar_lea.vmem %s590_s22, 128  ;;  %p785_p1 = scmp.lt.s32.totalorder %s590_s22, %s783_s13 }
  0x1f   : > { %696 = vmatprep.subr.msk.mxu1 %vm356_vm0, %v433_v9  ;;  %694 = vmatpush1.msk.msra.mxu0 %vm356_vm0, %v971_v6  ;;  %p779_p12 = scmp.ne.s32.totalorder %s590_s22, %s778_s9  ;;  %p786_p2 = scmp.lt.s32.totalorder %s784_s29, %s778_s9 }
  0x20   : > { %697 = vmatpush1.msk.msra.mxu1 %vm356_vm0, %v347_v7  ;;  %695 = vmatmul.mubr.msk.f32.vlgmr.msra.gmra.mxu0 %vm352_vm1, %v348_v10 }
  0x21   : > { %698 = vmatmul.mubr.msk.f32.vlgmr.msra.gmra.mxu1 %vm352_vm1, %v346_v11  ;;  %p780_p13 = pnand %p779_p12, %p942_p4  ;;  %p787_p3 = por %p786_p2, %p785_p1 }
  0x23   : > { %p781_p0 = pneg %p780_p13 }
  0x25   : > { %p788_p5 = pnand %p787_p3, %p781_p0 }
  0x95   : > { %v516_v12 = vpop.permute.xlu0 %515  ;;  %v546_v34 = vpop.permute.xlu1 %545 }
  0x96   : > { %v551_v39 = vrot.slane %v546_v34, %v550_v33 }
  0x99   : > { %v526_v23 = vpop.permute.xlu0 %525 }
  0xe0   : > { %v427_v13 = vpop.f32.mrf.mxu0 }
  0xe1   : > { %v507_v14 = vpop.f32.mrf.mxu1 }
  0xe2   : > { %v508_v15 = vadd.f32 %v507_v14, %v427_v13  ;;  %v429_v16 = vpop.f32.mrf.mxu0 }
  0xe3   : > { %v509_v17 = vpop.f32.mrf.mxu1 }
  0xe4   : > { %v518_v18 = vadd.f32 %v516_v12, %v508_v15  ;;  %v510_v19 = vadd.f32 %v509_v17, %v429_v16 }
  0xe6   : > { %v519_v20 = vadd.f32 %v516_v12, %v510_v19  ;;  %v520_v21 = vmax.f32 %v518_v18, 0.0 }
  0xe8   : > { %v521_v24 = vmax.f32 %v519_v20, 0.0  ;;  %v528_v25 = vmul.f32 %v526_v23, %v520_v21 }
  0xea   : > { %v529_v26 = vmul.f32 %v526_v23, %v521_v24  ;;  %v530_v27 = vrot.slane %v528_v25, 4 }
  0xec   : > { %v531_v29 = vadd.f32 %v530_v27, %v528_v25  ;;  %v536_v30 = vrot.slane %v529_v26, 4 }
  0xee   : > { %v532_v31 = vrot.slane %v531_v29, 2  ;;  %v537_v32 = vadd.f32 %v536_v30, %v529_v26 }
  0xf0   : > { %v533_v35 = vadd.f32 %v532_v31, %v531_v29  ;;  %v538_v36 = vrot.slane %v537_v32, 2 }
  0xf2   : > { %v539_v37 = vadd.f32 %v538_v36, %v537_v32  ;;  %v534_v38 = vrot.slane %v533_v35, 1 }
  0xf4   : > { %v535_v40 = vadd.f32 %v534_v38, %v533_v35  ;;  %v540_v41 = vrot.slane %v539_v37, 1 }
  0xf6   : > { %v541_v42 = vadd.f32 %v540_v41, %v539_v37  ;;  %v552_v43 = vadd.f32 %v551_v39, %v535_v40 }
  0xf8   : > { %v553_v44 = vadd.f32 %v551_v39, %v541_v42  ;;  %v699_v45 = vmul.f32 -1.442695, %v552_v43 }
  0xfa   : > { %770 = vpow2.f32 %v699_v45  ;;  %v700_v46 = vmul.f32 -1.442695, %v553_v44 }
  0xfc   : > { %772 = vpow2.f32 %v700_v46 }
 0x107   : > { %v771_v47 = vpop.eup %770 }
 0x108   : > { %v560_v48 = vadd.f32 1.0, %v771_v47 }
 0x109   : > { %v773_v49 = vpop.eup %772 }
 0x10a   : > { %v561_v50 = vadd.f32 1.0, %v773_v49  ;;  %774 = vrcp.f32 %v560_v48 }
 0x10c   : > { %776 = vrcp.f32 %v561_v50 }
 0x117   : > { %v775_v51 = vpop.eup %774 }
 0x119   : > { %v777_v52 = vpop.eup %776 }
 0x11a   : > { %v568_v53 = vcombine.low %v775_v51, %v777_v52 }
 0x11c   : > { %v570_v54 = vmul.f32 %v568_v53, %v971_v6 }
 0x11e   : > { %571 = vst [vmem:[%s324_s21] sm:$0xff] %v570_v54 }
 0x11f   : > { %791 = shalt.err (!%p788_p5)
}
 0x120   : > { %s792_s16 = scalar_lea.hbm %s587_s25, 128  ;;  %s796_s19 = scalar_lea.hbm %s1029_s7, 256 }
 0x121   : > { %p793_p6 = scmp.ne.s32.totalorder %s587_s25, %s792_s16  ;;  %p797_p10 = scmp.lt.s32.totalorder %s587_s25, %s1029_s7 }
 0x122   : > { %p798_p11 = scmp.lt.s32.totalorder %s796_s19, %s792_s16 }
 0x123   : > { %p794_p7 = pnand %p793_p6, %p942_p4 }
 0x124   : > { %p799_p12 = por %p798_p11, %p797_p10 }
 0x125   : > { %p795_p9 = pneg %p794_p7 }
 0x127   : > { %p800_p13 = pnand %p799_p12, %p795_p9 }
 0x129   : > { %803 = shalt.err (!%p800_p13)
}
 0x12a   : > { %709 = dma.vmem_to_hbm [thread:$0]  (%p942_p4), %s590_s22, 128, %s587_s25, %s573_s6  }
 0x12b PF: > { %p715_p0 = scmp.ge.s32.totalorder %s854_s8, 2  ;;  %s601_s23 = sand.u32 1, %s834_s26  }
 0x12c   : > { %s602_s24 = scalar_lea.sflag [#allocation4], %s601_s23 }
 0x12d   : > { %p712_p1 = pnand %p715_p0, %p949_p8 }
 0x12f   : > { %p713_p2 = pneg %p712_p1 }
 0x131   : > { %829 = dma.done.wait (%p713_p2), %s602_s24, 128  }
 0x132   : > { %831 = vsyncadd (%p713_p2), %s602_s24, 4294967168  ;;  %s22_s8 = sadd.s32 1, %s854_s8   ;;  %s1032_s26 = smov %s838_s27 }
 0x133   : > { %p19_p3 = scmp.ge.s32.totalorder %s22_s8, 4   ;;  %s1033_s27 = smov %s842_s28 }
 0x134   : > { %s1034_s28 = smov %s955_s15  ;;  %s1035_s29 = smov %s850_s30 }
 0x135   : > { %s1036_s30 = smov %s1038_s10  ;;  %21 = sbr.rel (!%p19_p3) target bundleno = 7 (0x7), region = 86 }
 0x13a   :  { %607 = vsyncpa [#allocation4], 1 }
 0x13b   :  { %609 = vsyncpa [#allocation4 + $0x1], 1 }

// kernel: tpu_custom_call.1
= control target key start
LH: loop header
LB: loop body
LE: loop exit
PB: predicated region body
PF: predicated region fallthrough
CT: control target
= control target key end

     0   :  { %s1022_s0 = inlined_call_operand.vmem [shape: f32[2,4,256], index: 0, kind: input, shape index: {}]   ;;  %s1023_s1 = inlined_call_operand.vmem [shape: f32[2,4,256], index: 1, kind: input, shape index: {}]   ;;  %s1024_s2 = inlined_call_operand.vmem [shape: f32[8,4], index: 2, kind: input, shape index: {}]   ;;  %s1025_s3 = inlined_call_operand.vmem [shape: f32[8,4], index: 3, kind: input, shape index: {}]   ;;  %s1026_s4 = inlined_call_operand.vmem [shape: f32[8,1], index: 4, kind: input, shape index: {}]   ;;  %s1027_s5 = inlined_call_operand.vmem [shape: f32[8,1], index: 5, kind: input, shape index: {}]   ;;  %s1028_s6 = inlined_call_operand.<no memory space> [shape: f32[1,1], index: 6, kind: input, shape index: {}]   ;;  %s1029_s7 = inlined_call_operand.hbm [shape: f32[2,4,256], index: 7, kind: output, shape index: {}]  }
   0x1   :  { %v12_v0 = vstv %s1028_s6 }
   0x2   :  { %13 = vst [vmem:[#allocation2] sm:$0x1] %v12_v0 }
   0x3   :  { %14 = vsyncpa [#allocation4], 0 }
   0x4   :  { %16 = vsyncpa [#allocation4 + $0x1], 0  ;;  %s902_s26 = smov 0   ;;  %s904_s27 = smov 0  }
   0x5   :  { %s906_s28 = smov 0   ;;  %s908_s29 = smov 0  }
   0x6   :  { %s910_s30 = smov 0   ;;  %s912_s8 = smov 0  }
   0x7 LB: > { %s683_s6 = sadd.s32 4294967295, %s854_s8   ;;  %s684_s9 = sadd.s32 4294967294, %s854_s8   ;;  %s854_s8 = sphi %s912_s8, %s22_s8   ;;  %s850_s30 = sphi %s910_s30, %s1036_s30   ;;  %s846_s29 = sphi %s908_s29, %s1035_s29   ;;  %s842_s28 = sphi %s906_s28, %s1034_s28   ;;  %s838_s27 = sphi %s904_s27, %s1033_s27   ;;  %s834_s26 = sphi %s902_s26, %s1032_s26  }
   0x8   : > { %s34_s10 = sadd.s32 1, %s850_s30  ;;  %s204_s11 = sadd.s32 1, %s842_s28 }
   0x9   : > { %p36_p0 = scmp.ge.s32.totalorder %s34_s10, 2  ;;  %p214_p1 = scmp.ne.s32.totalorder %s842_s28, %s838_s27 }
   0xa   : > { %p215_p2 = scmp.eq.s32.totalorder %s683_s6, 1  ;;  %p220_p3 = scmp.ne.s32.totalorder %s838_s27, %s834_s26 }
   0xb   : > { %s1038_s10 = smov (%p36_p0, %s34_s10), 0  ;;  %p221_p5 = scmp.eq.s32.totalorder %s684_s9, 1 }
   0xc   : > { %p942_p4 = por %p215_p2, %p214_p1  ;;  %s199_s13 = ssub.s32 %s850_s30, %s1038_s10 }
   0xd   : > { %p687_p6 = scmp.ge.s32.totalorder %s854_s8, 1  ;;  %p202_p7 = scmp.eq.s32.totalorder %s199_s13, 0 }
   0xe   : > { %p949_p8 = por %p221_p5, %p220_p3  ;;  %p280_p9 = scmp.lt.s32.totalorder %s854_s8, 3 }
   0xf   : > { %s955_s15 = scalar_select %p202_p7, %s842_s28, %s204_s11  }
  0x10   : > { %p281_p10 = pnand %p687_p6, %p280_p9 }
  0x11   : > { %p326_p11 = scmp.lt.s32.totalorder (!%p281_p10), %s846_s29, 1  ;;  %s708_s20 = sshll.u32 (!%p281_p10), %s846_s29, 7 }
  0x12   : > { %284 = sbr.rel (%p281_p10) target bundleno = 299 (0x12b), region = 48  ;;  %s587_s25 = scalar_lea.hbm (!%p281_p10), %s1029_s7, %s708_s20 }
  0x13   : > { %s858_s11 = smov (!%p281_p10), [#allocation3]  }
  0x14   : > { %s782_s13 = sshll.u32 (!%p281_p10), %s858_s11, 4  ;;  %s783_s13 = int_to_ptr.vmem [resolvable:$false] %s782_s13 }
  0x17   : > { %v856_v1 = vmov 0.0   ;;  %v512_v2 = vld [vmem:[%s1026_s4] sm:$0xff]  ;;  %s327_s18 = scalar_select %p326_p11, %s846_s29, 1  ;;  %v857_v4 = vmov 0   ;;  %vm356_vm0 = vcmask 1043456   ;;  %vm352_vm1 = vcmask 31744  }
  0x18   : > { %425 = vmatprep.mubr.f32.mxu0 %v856_v1  ;;  %505 = vmatprep.mubr.f32.mxu1 %v856_v1  ;;  %v542_v3 = vld [vmem:[#allocation2] sm:$0x1]  ;;  %v548_v22 = vlaneseq  ;;  %s784_s29 = scalar_lea.vmem %s783_s13, 256 }
  0x19   : > { %766 = vset.pattern.permute.xlu0 %v857_v4  ;;  %767 = vset.pattern.permute.xlu1 %v857_v4  ;;  %s706_s19 = sshll.u32 %s327_s18, 3  ;;  %v522_v5 = vld [vmem:[%s1027_s5] sm:$0xff]  ;;  %s322_s18 = sand.u32 1, %s838_s27  }
  0x1a   : > { %515 = vperm.xlu0 %766, %v512_v2   ;;  %545 = vperm.xlu1 %767, %v542_v3   ;;  %s343_s24 = scalar_lea.vmem %s1023_s1, %s706_s19  ;;  %s333_s9 = scalar_lea.vmem %s1022_s0, %s706_s19  ;;  %v348_v10 = vld [vmem:[%s1025_s3] sm:$0xff]  ;;  %v549_v28 = vshrl.u32 %v548_v22, 7 }
  0x1b   : > { %v971_v6 = vld [vmem:[%s343_s24] sm:$0xff]  ;;  %s688_s19 = sshll.u32 %s322_s18, 3  ;;  %s573_s6 = scalar_lea.sflag [#allocation4], %s322_s18 }
  0x1c   : > { %v347_v7 = vld [vmem:[%s333_s9] sm:$0xff]  ;;  %v351_v8 = vcombine.high %v971_v6, %v971_v6  ;;  %v550_v33 = vsub.s32 0, %v549_v28  ;;  %s324_s21 = scalar_lea.vmem [#allocation3], %s688_s19 }
  0x1d   : > { %v433_v9 = vcombine.high %v347_v7, %v347_v7  ;;  %v346_v11 = vld [vmem:[%s1024_s2] sm:$0xff]  ;;  %s589_s22 = sshll.u32 %s324_s21, 4  ;;  %s590_s22 = int_to_ptr.vmem [resolvable:$true] %s589_s22 }
  0x1e   : > { %525 = vperm.xlu0 %766, %v522_v5   ;;  %693 = vmatprep.subr.msk.mxu0 %vm356_vm0, %v351_v8  ;;  %s778_s9 = scalar_lea.vmem %s590_s22, 128  ;;  %p785_p1 = scmp.lt.s32.totalorder %s590_s22, %s783_s13 }
  0x1f   : > { %696 = vmatprep.subr.msk.mxu1 %vm356_vm0, %v433_v9  ;;  %694 = vmatpush1.msk.msra.mxu0 %vm356_vm0, %v971_v6  ;;  %p779_p12 = scmp.ne.s32.totalorder %s590_s22, %s778_s9  ;;  %p786_p2 = scmp.lt.s32.totalorder %s784_s29, %s778_s9 }
  0x20   : > { %697 = vmatpush1.msk.msra.mxu1 %vm356_vm0, %v347_v7  ;;  %695 = vmatmul.mubr.msk.f32.vlgmr.msra.gmra.mxu0 %vm352_vm1, %v348_v10 }
  0x21   : > { %698 = vmatmul.mubr.msk.f32.vlgmr.msra.gmra.mxu1 %vm352_vm1, %v346_v11  ;;  %p780_p13 = pnand %p779_p12, %p942_p4  ;;  %p787_p3 = por %p786_p2, %p785_p1 }
  0x23   : > { %p781_p0 = pneg %p780_p13 }
  0x25   : > { %p788_p5 = pnand %p787_p3, %p781_p0 }
  0x95   : > { %v516_v12 = vpop.permute.xlu0 %515  ;;  %v546_v34 = vpop.permute.xlu1 %545 }
  0x96   : > { %v551_v39 = vrot.slane %v546_v34, %v550_v33 }
  0x99   : > { %v526_v23 = vpop.permute.xlu0 %525 }
  0xe0   : > { %v427_v13 = vpop.f32.mrf.mxu0 }
  0xe1   : > { %v507_v14 = vpop.f32.mrf.mxu1 }
  0xe2   : > { %v508_v15 = vadd.f32 %v507_v14, %v427_v13  ;;  %v429_v16 = vpop.f32.mrf.mxu0 }
  0xe3   : > { %v509_v17 = vpop.f32.mrf.mxu1 }
  0xe4   : > { %v518_v18 = vadd.f32 %v516_v12, %v508_v15  ;;  %v510_v19 = vadd.f32 %v509_v17, %v429_v16 }
  0xe6   : > { %v519_v20 = vadd.f32 %v516_v12, %v510_v19  ;;  %v520_v21 = vmax.f32 %v518_v18, 0.0 }
  0xe8   : > { %v521_v24 = vmax.f32 %v519_v20, 0.0  ;;  %v528_v25 = vmul.f32 %v526_v23, %v520_v21 }
  0xea   : > { %v529_v26 = vmul.f32 %v526_v23, %v521_v24  ;;  %v530_v27 = vrot.slane %v528_v25, 4 }
  0xec   : > { %v531_v29 = vadd.f32 %v530_v27, %v528_v25  ;;  %v536_v30 = vrot.slane %v529_v26, 4 }
  0xee   : > { %v532_v31 = vrot.slane %v531_v29, 2  ;;  %v537_v32 = vadd.f32 %v536_v30, %v529_v26 }
  0xf0   : > { %v533_v35 = vadd.f32 %v532_v31, %v531_v29  ;;  %v538_v36 = vrot.slane %v537_v32, 2 }
  0xf2   : > { %v539_v37 = vadd.f32 %v538_v36, %v537_v32  ;;  %v534_v38 = vrot.slane %v533_v35, 1 }
  0xf4   : > { %v535_v40 = vadd.f32 %v534_v38, %v533_v35  ;;  %v540_v41 = vrot.slane %v539_v37, 1 }
  0xf6   : > { %v541_v42 = vadd.f32 %v540_v41, %v539_v37  ;;  %v552_v43 = vadd.f32 %v551_v39, %v535_v40 }
  0xf8   : > { %v553_v44 = vadd.f32 %v551_v39, %v541_v42  ;;  %v699_v45 = vmul.f32 -1.442695, %v552_v43 }
  0xfa   : > { %770 = vpow2.f32 %v699_v45  ;;  %v700_v46 = vmul.f32 -1.442695, %v553_v44 }
  0xfc   : > { %772 = vpow2.f32 %v700_v46 }
 0x107   : > { %v771_v47 = vpop.eup %770 }
 0x108   : > { %v560_v48 = vadd.f32 1.0, %v771_v47 }
 0x109   : > { %v773_v49 = vpop.eup %772 }
 0x10a   : > { %v561_v50 = vadd.f32 1.0, %v773_v49  ;;  %774 = vrcp.f32 %v560_v48 }
 0x10c   : > { %776 = vrcp.f32 %v561_v50 }
 0x117   : > { %v775_v51 = vpop.eup %774 }
 0x119   : > { %v777_v52 = vpop.eup %776 }
 0x11a   : > { %v568_v53 = vcombine.low %v775_v51, %v777_v52 }
 0x11c   : > { %v570_v54 = vmul.f32 %v568_v53, %v971_v6 }
 0x11e   : > { %571 = vst [vmem:[%s324_s21] sm:$0xff] %v570_v54 }
 0x11f   : > { %791 = shalt.err (!%p788_p5)
}
 0x120   : > { %s792_s16 = scalar_lea.hbm %s587_s25, 128  ;;  %s796_s19 = scalar_lea.hbm %s1029_s7, 256 }
 0x121   : > { %p793_p6 = scmp.ne.s32.totalorder %s587_s25, %s792_s16  ;;  %p797_p10 = scmp.lt.s32.totalorder %s587_s25, %s1029_s7 }
 0x122   : > { %p798_p11 = scmp.lt.s32.totalorder %s796_s19, %s792_s16 }
 0x123   : > { %p794_p7 = pnand %p793_p6, %p942_p4 }
 0x124   : > { %p799_p12 = por %p798_p11, %p797_p10 }
 0x125   : > { %p795_p9 = pneg %p794_p7 }
 0x127   : > { %p800_p13 = pnand %p799_p12, %p795_p9 }
 0x129   : > { %803 = shalt.err (!%p800_p13)
}
 0x12a   : > { %709 = dma.vmem_to_hbm [thread:$0]  (%p942_p4), %s590_s22, 128, %s587_s25, %s573_s6  }
 0x12b PF: > { %p715_p0 = scmp.ge.s32.totalorder %s854_s8, 2  ;;  %s601_s23 = sand.u32 1, %s834_s26  }
 0x12c   : > { %s602_s24 = scalar_lea.sflag [#allocation4], %s601_s23 }
 0x12d   : > { %p712_p1 = pnand %p715_p0, %p949_p8 }
 0x12f   : > { %p713_p2 = pneg %p712_p1 }
 0x131   : > { %829 = dma.done.wait (%p713_p2), %s602_s24, 128  }
 0x132   : > { %831 = vsyncadd (%p713_p2), %s602_s24, 4294967168  ;;  %s22_s8 = sadd.s32 1, %s854_s8   ;;  %s1032_s26 = smov %s838_s27 }
 0x133   : > { %p19_p3 = scmp.ge.s32.totalorder %s22_s8, 4   ;;  %s1033_s27 = smov %s842_s28 }
 0x134   : > { %s1034_s28 = smov %s955_s15  ;;  %s1035_s29 = smov %s850_s30 }
 0x135   : > { %s1036_s30 = smov %s1038_s10  ;;  %21 = sbr.rel (!%p19_p3) target bundleno = 7 (0x7), region = 86 }
 0x13a   :  { %607 = vsyncpa [#allocation4], 1 }
 0x13b   :  { %609 = vsyncpa [#allocation4 + $0x1], 1 }

</bundles_post_ra>
